<compile_context>
chip_gen: v6e
topology: v6e:2x2x1
jax: 0.10.0
libtpu: 0.0.40
codegen_flags: <defaults>
</compile_context>

<pallas_src>
import jax
import jax.numpy as jnp
from jax.experimental import pallas as pl
from jax.experimental.pallas import tpu as pltpu


LANE = 128          # TPU vreg lane width – feature dims padded to this
DEF_TILE_M = 256    # A_hat tile edge (rows and reduction); multiple of 128


def _round_up(x, m):
    return (x + m - 1) // m * m


def _choose_tile(n, max_tile=DEF_TILE_M):
    """Pick padded node count and a square A_hat tile edge that divides it."""
    np_ = _round_up(n, LANE)
    if np_ <= max_tile:
        return np_, np_          # whole graph in a single lane-dense tile
    np_ = _round_up(n, max_tile)
    return np_, max_tile


# ----------------------------------------------------------------------------
# Pallas kernels
# ----------------------------------------------------------------------------
def project_kernel(x_ref, w_ref, o_ref):
    """Per-row-tile GCNConv1 feature projection:  out_tile = X_tile @ W1."""
    o_ref[...] = jnp.dot(
        x_ref[...], w_ref[...], preferred_element_type=jnp.float32
    ).astype(o_ref.dtype)


def propagate1_train_kernel(a_ref, xw_ref, b1_ref, mask_ref, w2_ref, o_ref,
                            acc_ref):
    """K-tiled layer-1 propagation, relu + dropout + layer-2 projection fused
    into the epilogue:

        acc      += A[i,k] @ XW[k]
        out_tile  = (dropout(relu(acc + b1))) @ W2        (at last k)
    """
    k = pl.program_id(1)

    @pl.when(k == 0)
    def _():
        acc_ref[...] = jnp.zeros_like(acc_ref)

    acc_ref[...] += jnp.dot(
        a_ref[...], xw_ref[...], preferred_element_type=jnp.float32
    )

    @pl.when(k == pl.num_programs(1) - 1)
    def _():
        h = jnp.maximum(acc_ref[...] + b1_ref[...], 0.0)
        h = h * mask_ref[...].astype(jnp.float32)   # keep * 1/(1-p) scale
        o_ref[...] = jnp.dot(
            h.astype(w2_ref.dtype), w2_ref[...],
            preferred_element_type=jnp.float32,
        ).astype(o_ref.dtype)


def propagate1_eval_kernel(a_ref, xw_ref, b1_ref, w2_ref, o_ref, acc_ref):
    """Same as above with dropout disabled (inference path)."""
    k = pl.program_id(1)

    @pl.when(k == 0)
    def _():
        acc_ref[...] = jnp.zeros_like(acc_ref)

    acc_ref[...] += jnp.dot(
        a_ref[...], xw_ref[...], preferred_element_type=jnp.float32
    )

    @pl.when(k == pl.num_programs(1) - 1)
    def _():
        h = jnp.maximum(acc_ref[...] + b1_ref[...], 0.0)
        o_ref[...] = jnp.dot(
            h.astype(w2_ref.dtype), w2_ref[...],
            preferred_element_type=jnp.float32,
        ).astype(o_ref.dtype)


def propagate2_kernel(a_ref, hw_ref, b2_ref, o_ref, acc_ref):
    """K-tiled layer-2 propagation:  out_tile = sum_k A[i,k] @ HW[k] + b2."""
    k = pl.program_id(1)

    @pl.when(k == 0)
    def _():
        acc_ref[...] = jnp.zeros_like(acc_ref)

    acc_ref[...] += jnp.dot(
        a_ref[...], hw_ref[...], preferred_element_type=jnp.float32
    )

    @pl.when(k == pl.num_programs(1) - 1)
    def _():
        o_ref[...] = acc_ref[...] + b2_ref[...]


def predict_kernel(u_ref, i_ref, o_ref):
    """logit = sigmoid(sum(users * items, dim=1)); output laid out (1, B)."""
    uv = jnp.sum(u_ref[...] * i_ref[...], axis=1)
    o_ref[...] = (1.0 / (1.0 + jnp.exp(-uv)))[None, :]


# ----------------------------------------------------------------------------
# pallas_call wrappers
# ----------------------------------------------------------------------------
def project(x, w1, tile_m):
    n, cin = x.shape
    cout = w1.shape[1]
    return pl.pallas_call(
        project_kernel,
        out_shape=jax.ShapeDtypeStruct((n, cout), jnp.bfloat16),
        grid=(n // tile_m,),
        in_specs=[
            pl.BlockSpec((tile_m, cin), lambda i: (i, 0)),
            pl.BlockSpec((cin, cout), lambda i: (0, 0)),      # resident weight
        ],
        out_specs=pl.BlockSpec((tile_m, cout), lambda i: (i, 0)),
        compiler_params=pltpu.CompilerParams(
            dimension_semantics=("parallel",)),
    )(x, w1)


def propagate1(a_hat, xw, b1, w2, mask, tile, training):
    n = a_hat.shape[0]
    hp = xw.shape[1]
    dp = w2.shape[1]
    grid = (n // tile, n // tile)
    a_spec = pl.BlockSpec((tile, tile), lambda i, k: (i, k))   # streamed tiles
    xw_spec = pl.BlockSpec((tile, hp), lambda i, k: (k, 0))    # streamed over k
    b_spec = pl.BlockSpec((1, hp), lambda i, k: (0, 0))        # fetched once
    w2_spec = pl.BlockSpec((hp, dp), lambda i, k: (0, 0))      # fetched once
    out_spec = pl.BlockSpec((tile, dp), lambda i, k: (i, 0))
    out_shape = jax.ShapeDtypeStruct((n, dp), jnp.bfloat16)
    scratch = [pltpu.VMEM((tile, hp), jnp.float32)]
    cp = pltpu.CompilerParams(
        dimension_semantics=("parallel", "arbitrary"))
    if training:
        mask_spec = pl.BlockSpec((tile, hp), lambda i, k: (i, 0))
        return pl.pallas_call(
            propagate1_train_kernel,
            out_shape=out_shape,
            grid=grid,
            in_specs=[a_spec, xw_spec, b_spec, mask_spec, w2_spec],
            out_specs=out_spec,
            scratch_shapes=scratch,
            compiler_params=cp,
        )(a_hat, xw, b1, mask, w2)
    return pl.pallas_call(
        propagate1_eval_kernel,
        out_shape=out_shape,
        grid=grid,
        in_specs=[a_spec, xw_spec, b_spec, w2_spec],
        out_specs=out_spec,
        scratch_shapes=scratch,
        compiler_params=cp,
    )(a_hat, xw, b1, w2)


def propagate2(a_hat, hw, b2, tile):
    n = a_hat.shape[0]
    dp = hw.shape[1]
    grid = (n // tile, n // tile)
    return pl.pallas_call(
        propagate2_kernel,
        out_shape=jax.ShapeDtypeStruct((n, dp), jnp.float32),
        grid=grid,
        in_specs=[
            pl.BlockSpec((tile, tile), lambda i, k: (i, k)),
            pl.BlockSpec((tile, dp), lambda i, k: (k, 0)),
            pl.BlockSpec((1, dp), lambda i, k: (0, 0)),
        ],
        out_specs=pl.BlockSpec((tile, dp), lambda i, k: (i, 0)),
        scratch_shapes=[pltpu.VMEM((tile, dp), jnp.float32)],
        compiler_params=pltpu.CompilerParams(
            dimension_semantics=("parallel", "arbitrary")),
    )(a_hat, hw, b2)


def predict(users, items):
    b = users.shape[0]
    out = pl.pallas_call(
        predict_kernel,
        out_shape=jax.ShapeDtypeStruct((1, b), jnp.float32),
        in_specs=[pl.BlockSpec(memory_space=pltpu.MemorySpace.VMEM)] * 2,
        out_specs=pl.BlockSpec(memory_space=pltpu.MemorySpace.VMEM),
    )(users, items)
    return out[0]


# ----------------------------------------------------------------------------
# Plain-JAX glue (adjacency normalization, embedding renorm, padding)
# ----------------------------------------------------------------------------
def renorm_max_norm(w, max_norm=1.0, eps=1e-7):
    """nn.Embedding(max_norm=1) renorm applied to looked-up rows.
    # TODO(synk): PyTorch renormalizes in-place only the gathered rows; forward
    # values match here, but the stateful in-place table update is not modeled.
    """
    n = jnp.linalg.norm(w, axis=1, keepdims=True)
    scale = jnp.minimum(1.0, max_norm / jnp.maximum(n, eps))
    return w * scale


def build_norm_adj(edge_index, n):
    """Dense A_hat = D^-1/2 (A + I) D^-1/2 with A_hat[target, source].
    # TODO(synk): for production-size graphs replace this dense A_hat with a
    # CSR SpMM driven by scalar-prefetched row offsets instead of densifying.
    """
    row, col = edge_index[0], edge_index[1]          # source -> target
    loops = jnp.arange(n, dtype=edge_index.dtype)
    row = jnp.concatenate([row, loops])
    col = jnp.concatenate([col, loops])
    a = jnp.zeros((n, n), jnp.float32).at[col, row].add(1.0)
    deg = a.sum(axis=1)                              # in-degree (incl. self-loop)
    dis = jnp.where(deg > 0, 1.0 / jnp.sqrt(deg), 0.0)
    return dis[:, None] * a * dis[None, :]


def glorot_uniform(key, shape):
    fan_in, fan_out = shape
    limit = jnp.sqrt(6.0 / (fan_in + fan_out))
    return jax.random.uniform(key, shape, jnp.float32, -limit, limit)


def _pad2(x, rows, cols):
    return jnp.pad(x, ((0, rows - x.shape[0]), (0, cols - x.shape[1])))


def gcn4rec_forward(params, u, i, edge_index, n_entitys, dropout_key,
                    training=True):
    dim = params["ent_emb"].shape[1]
    hidden = params["w1"].shape[1]

    # --- tiling / padding geometry ------------------------------------------
    np_, tile = _choose_tile(n_entitys)           # padded node count, tile edge
    dpad = _round_up(dim, LANE)                   # lane-dense feature widths
    hp = _round_up(hidden, LANE)

    # --- adjacency, embeddings, dropout mask (plain JAX) ---------------------
    a_hat = _pad2(build_norm_adj(edge_index, n_entitys), np_, np_)
    a_hat = a_hat.astype(jnp.bfloat16)                   # halves HBM/VMEM traffic

    x = renorm_max_norm(params["ent_emb"])               # entity lookup, max_norm=1
    x = _pad2(x, np_, dpad).astype(jnp.bfloat16)

    w1 = _pad2(params["w1"], dpad, hp).astype(jnp.bfloat16)
    b1 = _pad2(params["b1"], 1, hp)
    w2 = _pad2(params["w2"], hp, dpad).astype(jnp.bfloat16)
    b2 = _pad2(params["b2"], 1, dpad)

    if training:
        # F.dropout(p=0.5, training=True): keep w.p. 0.5, scale kept by 2.
        keep = jax.random.bernoulli(dropout_key, 0.5, (np_, hp))
        mask = (keep.astype(jnp.float32) * 2.0).astype(jnp.bfloat16)
    else:
        mask = None

    # --- Pallas pipeline ------------------------------------------------------
    xw = project(x, w1, tile)                                  # (NP, HP) bf16
    hw = propagate1(a_hat, xw, b1, w2, mask, tile, training)   # (NP, DP) bf16 = H @ W2
    h_all = propagate2(a_hat, hw, b2, tile)                    # (NP, DP) f32

    items = h_all[i][:, :dim]                               # gather batch items
    users = renorm_max_norm(params["user_emb"])[u]          # user lookup, max_norm=1
    return predict(users, items)


# ----------------------------------------------------------------------------
if __name__ == "__main__":
    key = jax.random.PRNGKey(0)
    n_users, n_entitys = 32, 64
    dim, hidden_dim = 16, 32
    batch, n_edges = 8, 128

    ks = jax.random.split(key, 8)
    params = {
        "user_emb": jax.random.normal(ks[0], (n_users, dim), jnp.float32),
        "ent_emb": jax.random.normal(ks[1], (n_entitys, dim), jnp.float32),
        # GCNConv linear weights: glorot init, zero bias (torch_geometric default)
        "w1": glorot_uniform(ks[2], (dim, hidden_dim)),
        "b1": jnp.zeros((1, hidden_dim), jnp.float32),
        "w2": glorot_uniform(ks[3], (hidden_dim, dim)),
        "b2": jnp.zeros((1, dim), jnp.float32),
    }

    edge_index = jax.random.randint(ks[4], (2, n_edges), 0, n_entitys,
                                    dtype=jnp.int32)
    u = jax.random.randint(ks[5], (batch,), 0, n_users, dtype=jnp.int32)
    i = jax.random.randint(ks[6], (batch,), 0, n_entitys, dtype=jnp.int32)

    logit = gcn4rec_forward(params, u, i, edge_index, n_entitys,
                            dropout_key=ks[7], training=True)
    logit = jax.block_until_ready(logit)
    assert logit.shape == (batch,)
    assert bool(jnp.all(jnp.isfinite(logit)))
    print("KERNEL_OK")
</pallas_src>

<mosaic_0001>
module attributes {stable_mosaic.version = 11 : i64} {
  func.func @project_kernel(%arg0: i32, %arg1: memref<128x128xbf16, #tpu.memory_space<vmem>>, %arg2: memref<128x128xbf16, #tpu.memory_space<vmem>>, %arg3: memref<128x128xbf16, #tpu.memory_space<vmem>>) attributes {dimension_semantics = [#tpu.dimension_semantics<parallel>], iteration_bounds = array<i64: 1>, scalar_prefetch = 0 : i64, scratch_operands = 0 : i64, tpu.core_type = #tpu.core_type<tc>, window_params = [{transform_indices = @transform_0, window_bounds = array<i64: 128, 128>}, {pipeline_mode = #tpu.pipeline_mode<synchronous>, transform_indices = @transform_1, window_bounds = array<i64: 128, 128>}, {transform_indices = @transform_2, window_bounds = array<i64: 128, 128>}]} {
    %c0 = arith.constant 0 : index
    %c0_0 = arith.constant 0 : index
    %0 = vector.load %arg1[%c0, %c0_0] : memref<128x128xbf16, #tpu.memory_space<vmem>>, vector<128x128xbf16>
    %c0_1 = arith.constant 0 : index
    %c0_2 = arith.constant 0 : index
    %1 = vector.load %arg2[%c0_1, %c0_2] : memref<128x128xbf16, #tpu.memory_space<vmem>>, vector<128x128xbf16>
    %cst = arith.constant dense<0.000000e+00> : vector<128x128xf32>
    %2 = tpu.matmul %0, %1, %cst {dimension_numbers = #tpu.dot_dimension_numbers<[1], [0], [0], [1], [0, 0, 1, 1], [], []>} : vector<128x128xbf16>, vector<128x128xbf16>, vector<128x128xf32> -> vector<128x128xf32>
    %3 = arith.truncf %2 : vector<128x128xf32> to vector<128x128xbf16>
    %c0_3 = arith.constant 0 : index
    %c0_4 = arith.constant 0 : index
    %4 = vector.load %arg3[%c0_3, %c0_4] : memref<128x128xbf16, #tpu.memory_space<vmem>>, vector<128x128xbf16>
    tpu.vector_store %arg3[%c0_3, %c0_4], %3 {strides = array<i32>} : memref<128x128xbf16, #tpu.memory_space<vmem>>, vector<128x128xbf16>,
    return
  }
  func.func @transform_0(%arg0: i32) -> (i32, i32) {
    %c0_i32 = arith.constant 0 : i32
    %c0_i32_0 = arith.constant 0 : i32
    return %arg0, %c0_i32 : i32, i32
  }
  func.func @transform_1(%arg0: i32) -> (i32, i32) {
    %c0_i32 = arith.constant 0 : i32
    %c0_i32_0 = arith.constant 0 : i32
    %c0_i32_1 = arith.constant 0 : i32
    return %c0_i32, %c0_i32_0 : i32, i32
  }
  func.func @transform_2(%arg0: i32) -> (i32, i32) {
    %c0_i32 = arith.constant 0 : i32
    %c0_i32_0 = arith.constant 0 : i32
    return %arg0, %c0_i32 : i32, i32
  }
}

</mosaic_0001>

<bundles_post_ra>
// kernel: tpu_custom_call.1
= control target key start
LH: loop header
LB: loop body
LE: loop exit
PB: predicated region body
PF: predicated region fallthrough
CT: control target
= control target key end

     0   :  { %7 = vsyncpa [#allocation3], 0  ;;  %s648_s0 = inlined_call_operand.hbm [shape: bf16[128,128], index: 0, kind: input, shape index: {}]   ;;  %s649_s1 = inlined_call_operand.hbm [shape: bf16[128,128], index: 1, kind: input, shape index: {}]   ;;  %s650_s2 = inlined_call_operand.hbm [shape: bf16[128,128], index: 2, kind: output, shape index: {}]  }
   0x1   :  { %8 = vsyncpa [#allocation6], 0 }
   0x2   :  { %9 = vsyncpa [#allocation4], 0  ;;  %s610_s9 = smov [#allocation2]  }
   0x3   :  { %s15_s10 = sshll.u32 %s610_s9, 4  ;;  %s16_s10 = int_to_ptr.vmem [resolvable:$true] %s15_s10 }
   0x4   :  { %s552_s11 = scalar_lea.vmem %s16_s10, 1024  ;;  %p557_p1 = scmp.lt.s32.totalorder %s16_s10, %s16_s10 }
   0x5   :  { %p553_p0 = scmp.ne.s32.totalorder %s16_s10, %s552_s11  ;;  %p558_p2 = scmp.lt.s32.totalorder %s552_s11, %s552_s11 }
   0x7   :  { %p559_p3 = por %p558_p2, %p557_p1 }
   0x9   :  { %p560_p4 = pnand %p559_p3, %p553_p0 }
   0xb   :  { %563 = shalt.err (!%p560_p4)
}
   0xc   :  { %s611_s12 = smov 64   ;;  %s612_s13 = smov 4  }
   0xd   :  { %21 = dma.hbm_to_vmem [thread:$0]  %s648_s0, 1024, %s16_s10, [#allocation3], %s611_s12, %s611_s12, %s612_s13  }
   0xe   :  { %s613_s16 = smov [#allocation5]  }
   0xf   :  { %s27_s17 = sshll.u32 %s613_s16, 4  ;;  %s28_s17 = int_to_ptr.vmem [resolvable:$true] %s27_s17 }
  0x10   :  { %s572_s18 = scalar_lea.vmem %s28_s17, 1024  ;;  %p577_p6 = scmp.lt.s32.totalorder %s28_s17, %s28_s17 }
  0x11   :  { %p573_p5 = scmp.ne.s32.totalorder %s28_s17, %s572_s18  ;;  %p578_p7 = scmp.lt.s32.totalorder %s572_s18, %s572_s18 }
  0x13   :  { %p579_p8 = por %p578_p7, %p577_p6 }
  0x15   :  { %p580_p9 = pnand %p579_p8, %p573_p5 }
  0x17   :  { %583 = shalt.err (!%p580_p9)
}
  0x18   :  { %33 = dma.hbm_to_vmem [thread:$0]  %s649_s1, 1024, %s28_s17, [#allocation6], %s611_s12, %s611_s12, %s612_s13  }
  0x19   :  { %604 = dma.done.wait [#allocation3], 1024  }
  0x1a   :  { %605 = vsyncadd [#allocation3], 4294966272 }
  0x1b   :  { %606 = dma.done.wait [#allocation6], 1024  }
  0x1c   :  { %607 = vsyncadd [#allocation6], 4294966272  ;;  %v528_v0 = vld [vmem:[#allocation5 + $0x38] sm:$0xff]   ;;  %v529_v1 = vld [vmem:[#allocation5 + $0x30] sm:$0xff]   ;;  %s614_s0 = smov [#allocation7]  }
  0x1d   :  { %475 = vmatprep.subr.bf16.mxu0 %v528_v0  ;;  %507 = vmatprep.subr.bf16.mxu1 %v528_v0  ;;  %v530_v2 = vld [vmem:[#allocation5 + $0x28] sm:$0xff]   ;;  %v531_v3 = vld [vmem:[#allocation5 + $0x20] sm:$0xff]   ;;  %v532_v6 = vld [vmem:[#allocation5 + $0x18] sm:$0xff]   ;;  %s351_s1 = sshll.u32 %s614_s0, 4  ;;  %s352_s1 = int_to_ptr.vmem [resolvable:$true] %s351_s1 }
  0x1e   :  { %476 = vmatpush3.bf16.msra.mxu0 %v528_v0  ;;  %515 = vmatpush3.bf16.msra.mxu1 %v528_v0  ;;  %v536_v4 = vld [vmem:[#allocation2] sm:$0xff]   ;;  %v533_v7 = vld [vmem:[#allocation5 + $0x10] sm:$0xff]   ;;  %v534_v8 = vld [vmem:[#allocation5 + $0x8] sm:$0xff]   ;;  %s584_s21 = scalar_lea.vmem %s352_s1, 1024  ;;  %p589_p11 = scmp.lt.s32.totalorder %s352_s1, %s352_s1 }
  0x1f   :  { %477 = vmatprep.subr.bf16.mxu0 %v529_v1  ;;  %508 = vmatprep.subr.bf16.mxu1 %v529_v1  ;;  %v537_v5 = vld [vmem:[#allocation2 + $0x20] sm:$0xff]   ;;  %v538_v10 = vld [vmem:[#allocation2 + $0x8] sm:$0xff]   ;;  %v540_v12 = vld [vmem:[#allocation2 + $0x10] sm:$0xff]   ;;  %p585_p10 = scmp.ne.s32.totalorder %s352_s1, %s584_s21  ;;  %p590_p12 = scmp.lt.s32.totalorder %s584_s21, %s584_s21 }
  0x20   :  { %491 = vmatprep.mubr.bf16.mxu0 %v536_v4  ;;  %499 = vmatprep.mubr.bf16.mxu1 %v537_v5  ;;  %v535_v9 = vld [vmem:[#allocation5] sm:$0xff]   ;;  %v539_v11 = vld [vmem:[#allocation2 + $0x28] sm:$0xff]   ;;  %v541_v13 = vld [vmem:[#allocation2 + $0x30] sm:$0xff]  }
  0x21   :  { %v542_v14 = vld [vmem:[#allocation2 + $0x18] sm:$0xff]   ;;  %p591_p13 = por %p590_p12, %p589_p11 }
  0x22   :  { %478 = vmatpush3.bf16.msra.mxu0 %v529_v1  ;;  %516 = vmatpush3.bf16.msra.mxu1 %v529_v1  ;;  %v543_v15 = vld [vmem:[#allocation2 + $0x38] sm:$0xff]  }
  0x23   :  { %479 = vmatprep.subr.bf16.mxu0 %v530_v2  ;;  %509 = vmatprep.subr.bf16.mxu1 %v530_v2  ;;  %p592_p0 = pnand %p591_p13, %p585_p10 }
  0x26   :  { %480 = vmatpush3.bf16.msra.mxu0 %v530_v2  ;;  %517 = vmatpush3.bf16.msra.mxu1 %v530_v2 }
  0x27   :  { %481 = vmatprep.subr.bf16.mxu0 %v531_v3  ;;  %510 = vmatprep.subr.bf16.mxu1 %v531_v3 }
  0x2a   :  { %482 = vmatpush3.bf16.msra.mxu0 %v531_v3  ;;  %518 = vmatpush3.bf16.msra.mxu1 %v531_v3 }
  0x2b   :  { %483 = vmatprep.subr.bf16.mxu0 %v532_v6  ;;  %511 = vmatprep.subr.bf16.mxu1 %v532_v6 }
  0x2e   :  { %484 = vmatpush3.bf16.msra.mxu0 %v532_v6  ;;  %519 = vmatpush3.bf16.msra.mxu1 %v532_v6 }
  0x2f   :  { %485 = vmatprep.subr.bf16.mxu0 %v533_v7  ;;  %512 = vmatprep.subr.bf16.mxu1 %v533_v7 }
  0x32   :  { %486 = vmatpush3.bf16.msra.mxu0 %v533_v7  ;;  %520 = vmatpush3.bf16.msra.mxu1 %v533_v7 }
  0x33   :  { %487 = vmatprep.subr.bf16.mxu0 %v534_v8  ;;  %513 = vmatprep.subr.bf16.mxu1 %v534_v8 }
  0x36   :  { %488 = vmatpush3.bf16.msra.mxu0 %v534_v8  ;;  %521 = vmatpush3.bf16.msra.mxu1 %v534_v8 }
  0x37   :  { %489 = vmatprep.subr.bf16.mxu0 %v535_v9  ;;  %514 = vmatprep.subr.bf16.mxu1 %v535_v9 }
  0x3a   :  { %490 = vmatpush3.bf16.msra.mxu0 %v535_v9  ;;  %522 = vmatpush3.bf16.msra.mxu1 %v535_v9 }
  0x3d   :  { %492 = vmatmul.mubr.bf16.vlgmr.msra.gmra.mxu0 %v538_v10  ;;  %500 = vmatmul.mubr.bf16.vlgmr.msra.gmra.mxu1 %v539_v11 }
  0x3e   :  { %495 = vmatprep.mubr.bf16.mxu0 %v540_v12  ;;  %503 = vmatprep.mubr.bf16.mxu1 %v541_v13 }
  0x45   :  { %496 = vmatmul.mubr.bf16.gmra.mxu0 %v542_v14  ;;  %504 = vmatmul.mubr.bf16.gmra.mxu1 %v543_v15 }
  0xfd   :  { %v493_v16 = vpop.f32.mrf.mxu0  ;;  %v501_v17 = vpop.f32.mrf.mxu1 }
  0xff   :  { %v203_v18 = vpop.f32.mrf.mxu0  ;;  %v235_v19 = vpop.f32.mrf.mxu1 }
 0x101   :  { %v494_v20 = vpop.f32.mrf.mxu0  ;;  %v502_v21 = vpop.f32.mrf.mxu1 }
 0x102   :  { %v420_v22 = vpack.c.bf16 %v494_v20, %v493_v16  ;;  %v440_v23 = vpack.c.bf16 %v502_v21, %v501_v17 }
 0x103   :  { %v206_v24 = vpop.f32.mrf.mxu0  ;;  %v238_v25 = vpop.f32.mrf.mxu1 }
 0x104   :  { %452 = vst [vmem:[#allocation7 + $0x8] sm:$0xff] %v420_v22   ;;  %456 = vst [vmem:[#allocation7 + $0x28] sm:$0xff] %v440_v23   ;;  %v415_v26 = vpack.c.bf16 %v206_v24, %v203_v18  ;;  %v435_v27 = vpack.c.bf16 %v238_v25, %v235_v19 }
 0x105   :  { %v497_v28 = vpop.f32.mrf.mxu0  ;;  %v505_v29 = vpop.f32.mrf.mxu1 }
 0x106   :  { %416 = vst [vmem:[#allocation7] sm:$0xff] %v415_v26   ;;  %455 = vst [vmem:[#allocation7 + $0x20] sm:$0xff] %v435_v27  }
 0x107   :  { %v219_v30 = vpop.f32.mrf.mxu0  ;;  %v251_v31 = vpop.f32.mrf.mxu1 }
 0x109   :  { %v498_v32 = vpop.f32.mrf.mxu0  ;;  %v506_v33 = vpop.f32.mrf.mxu1 }
 0x10a   :  { %v430_v34 = vpack.c.bf16 %v498_v32, %v497_v28  ;;  %v450_v35 = vpack.c.bf16 %v506_v33, %v505_v29 }
 0x10b   :  { %v222_v36 = vpop.f32.mrf.mxu0  ;;  %v254_v37 = vpop.f32.mrf.mxu1 }
 0x10c   :  { %454 = vst [vmem:[#allocation7 + $0x18] sm:$0xff] %v430_v34   ;;  %458 = vst [vmem:[#allocation7 + $0x38] sm:$0xff] %v450_v35   ;;  %v425_v38 = vpack.c.bf16 %v222_v36, %v219_v30  ;;  %v445_v39 = vpack.c.bf16 %v254_v37, %v251_v31 }
 0x10e   :  { %453 = vst [vmem:[#allocation7 + $0x10] sm:$0xff] %v425_v38   ;;  %457 = vst [vmem:[#allocation7 + $0x30] sm:$0xff] %v445_v39  }
 0x10f   :  { %595 = shalt.err (!%p592_p0)
}
 0x110   :  { %357 = dma.vmem_to_hbm [thread:$0]  %s352_s1, 1024, %s650_s2, [#allocation4], %s611_s12, %s611_s12, %s612_s13  }
 0x111   :  { %608 = dma.done.wait [#allocation4], 1024  }
 0x112   :  { %609 = vsyncadd [#allocation4], 4294966272 }
 0x113   :  { %361 = vsyncpa [#allocation3], 1 }
 0x114   :  { %362 = vsyncpa [#allocation6], 1 }
 0x115   :  { %363 = vsyncpa [#allocation4], 1 }

</bundles_post_ra>
